<compile_context>
chip_gen: v5e
topology: v5e:2x2
jax: 0.10.0
libtpu: 0.0.40
codegen_flags: <defaults>
</compile_context>

<pallas_src>
import functools

import jax
import jax.numpy as jnp
from jax.experimental import pallas as pl
from jax.experimental.pallas import tpu as pltpu


def _round_up(x, m):
    return (x + m - 1) // m * m


def _mlp_fused_kernel(*refs, num_hidden):
    """Entire MLP in one kernel invocation.

    refs layout:
      refs[0]                      : x tile (tm, K_pad)       bf16
      refs[1 .. 1+num_hidden]      : W_0 .. W_last             bf16, BN scale pre-folded
      refs[-2]                     : packed affine (Lp, Npmax) f32  (row i = shift_i / last bias)
      refs[-1]                     : output tile (tm, Nout_pad) f32
    Matmuls run on the MXU with f32 accumulation; add+ReLU epilogues run on the VPU in
    f32, fully fused, no intermediate HBM traffic.
    """
    x_ref = refs[0]
    w_refs = refs[1:2 + num_hidden]
    aff_ref = refs[-2]
    o_ref = refs[-1]

    h = x_ref[...]                                             # bf16 (tm, Kp)
    for li in range(num_hidden):
        w = w_refs[li]
        y = jnp.dot(h, w[...], preferred_element_type=jnp.float32)      # MXU, f32 acc
        shift = aff_ref[li:li + 1, :w.shape[1]]                          # f32 (1, Np)
        # BN scale is pre-folded into W; epilogue stays in f32 (v5e-safe), then
        # cast back to bf16 for the next MXU pass.
        h = jnp.maximum(y + shift, 0.0).astype(jnp.bfloat16)
        # Dropout(p=0.5) is the identity in eval mode.
    w = w_refs[num_hidden]
    y = jnp.dot(h, w[...], preferred_element_type=jnp.float32)
    y = y + aff_ref[num_hidden:num_hidden + 1, :w.shape[1]]
    o_ref[...] = y.astype(o_ref.dtype)


def init_params(key, input_size, hidden_sizes, output_size):
    """Deterministic raw parameters (PyTorch-Linear-style uniform init + BN stats).

    Returns a list of tuples (w, b, scale, shift): for hidden layers scale/shift are the
    eval-mode BatchNorm affine; for the last layer scale=1, shift=0 (no BatchNorm).
    """
    flat_in = int(jnp.prod(jnp.array(input_size)))
    sizes = [flat_in] + list(hidden_sizes) + [output_size]
    params = []
    for i in range(len(sizes) - 1):
        fan_in, fan_out = sizes[i], sizes[i + 1]
        key, kw, kb, kg, kbeta, km, kv = jax.random.split(key, 7)
        bound = 1.0 / (fan_in ** 0.5)
        w = jax.random.uniform(kw, (fan_in, fan_out), jnp.float32, -bound, bound)
        b = jax.random.uniform(kb, (1, fan_out), jnp.float32, -bound, bound)
        if i < len(sizes) - 2:  # hidden layers have BatchNorm1d
            gamma = 1.0 + 0.1 * jax.random.normal(kg, (1, fan_out), jnp.float32)
            beta = 0.1 * jax.random.normal(kbeta, (1, fan_out), jnp.float32)
            running_mean = 0.1 * jax.random.normal(km, (1, fan_out), jnp.float32)
            running_var = 1.0 + 0.1 * jax.random.uniform(kv, (1, fan_out), jnp.float32)
            eps = 1e-5
            scale = gamma / jnp.sqrt(running_var + eps)
            shift = beta - running_mean * scale
        else:
            scale = jnp.ones((1, fan_out), jnp.float32)
            shift = jnp.zeros((1, fan_out), jnp.float32)
        params.append((w, b, scale, shift))
    return params


def prepare_kernel_params(params):
    """One-time parameter transform (runs eagerly, NOT inside the jitted forward).

      * fold Linear bias + eval-mode BatchNorm into a single per-layer shift,
      * fold the BN scale directly into the weight columns,
      * zero-pad all feature dims to multiples of 128 (lane-dense),
      * cast weights to bf16 (MXU-native; halves weight DMA bytes + resident VMEM),
      * stack every per-layer (1,N) shift/bias into ONE padded f32 array so the kernel
        takes a single tiny input instead of one per layer.

    Returns (weights: list[bf16 (Kp,Np)], affine: f32 (Lp,Npmax), meta: dict of python ints).
    """
    n_layers = len(params)
    num_hidden = n_layers - 1
    padded_widths = [_round_up(w.shape[1], 128) for (w, _, _, _) in params]
    np_max = max(padded_widths)

    weights = []
    affine = jnp.zeros((_round_up(n_layers, 8), np_max), jnp.float32)
    k_true = params[0][0].shape[0]
    k_prev_pad = _round_up(k_true, 128)
    for i, (w, b, scale, shift) in enumerate(params):
        k_in, n_out = w.shape
        n_pad = padded_widths[i]
        w_folded = w * scale                       # fold BN scale into weight columns
        wp = jnp.zeros((k_prev_pad, n_pad), jnp.float32).at[:k_in, :n_out].set(w_folded)
        weights.append(wp.astype(jnp.bfloat16))
        vec = b * scale + shift                    # folded shift (last layer: just bias)
        affine = affine.at[i, :n_out].set(vec[0])
        k_prev_pad = n_pad

    meta = {
        "num_hidden": num_hidden,
        "k_true": k_true,
        "n_out_true": params[-1][0].shape[1],
    }
    return weights, affine, meta


def _derive_batch_tiling(batch, tile_m):
    """Pad batch to a sublane-friendly size and pick the row tile.

    tile_m defaults large (512) to amortize per-grid-step overhead; when the padded
    batch exceeds one sublane tile we force >= 2 grid steps so ("parallel",) can
    shard across both v7x TensorCores (no effect on v5e/v6e: 1 TC/chip).
    """
    bp = _round_up(max(batch, 8), 8)
    tm = min(_round_up(tile_m, 8), bp)
    if bp > 8 and bp // tm < 2:
        tm = max(8, _round_up(bp // 2, 8))
    bp = _round_up(bp, tm)
    return bp, tm


def mlp_drop_bnorm_forward(x, weights, affine, meta, *, tile_m=512):
    """x: (B, C, H, W) float32. Returns (B, output_size). One fused pallas_call.

    All parameter padding/folding already happened in prepare_kernel_params; the only
    per-call data prep is padding + bf16-casting x (tiny, fuses under jit).
    """
    B = x.shape[0]
    x_flat = x.reshape(B, -1)                      # torch.flatten(x, start_dim=1)
    assert x_flat.shape[1] == meta["k_true"]
    num_hidden = meta["num_hidden"]
    n_out_true = meta["n_out_true"]
    k_pad = weights[0].shape[0]
    n_out_pad = weights[-1].shape[1]

    Bp, tm = _derive_batch_tiling(B, tile_m)

    xp = jnp.zeros((Bp, k_pad), jnp.bfloat16).at[:B, :meta["k_true"]].set(
        x_flat.astype(jnp.bfloat16))

    in_specs = [pl.BlockSpec((tm, k_pad), lambda i: (i, 0))]
    for w in weights:
        # Full-array blocks; index never changes across the grid (weights stay resident).
        in_specs.append(pl.BlockSpec(w.shape, lambda i: (0, 0)))
    in_specs.append(pl.BlockSpec(affine.shape, lambda i: (0, 0)))

    kernel = functools.partial(_mlp_fused_kernel, num_hidden=num_hidden)
    out_padded = pl.pallas_call(
        kernel,
        out_shape=jax.ShapeDtypeStruct((Bp, n_out_pad), jnp.float32),
        grid=(Bp // tm,),
        in_specs=in_specs,
        # Keep the 128-lane-padded output width (unmasked vst); slice afterwards.
        out_specs=pl.BlockSpec((tm, n_out_pad), lambda i: (i, 0)),
        compiler_params=pltpu.CompilerParams(
            dimension_semantics=("parallel",)),
    )(xp, *weights, affine)
    return out_padded[:B, :n_out_true]


if __name__ == "__main__":
    key = jax.random.PRNGKey(0)
    k_in, k_par = jax.random.split(key)

    # Small, module-consistent shapes.
    input_size = (4, 16, 16)        # C, H, W  -> flattened 1024 features
    hidden_sizes = [32, 32]
    output_size = 10
    batch = 2

    x = jax.random.normal(k_in, (batch,) + input_size, jnp.float32)
    raw_params = init_params(k_par, input_size, hidden_sizes, output_size)
    weights, affine, meta = prepare_kernel_params(raw_params)   # one-time prep

    fwd = jax.jit(lambda xx, ww, aa: mlp_drop_bnorm_forward(xx, ww, aa, meta))
    out = jax.block_until_ready(fwd(x, weights, affine))

    # Pure-JAX f32 reference with un-folded math (true eval-mode module semantics).
    ref = x.reshape(batch, -1)
    for i, (w, b, scale, shift) in enumerate(raw_params):
        ref = (ref @ w + b) * scale + shift
        if i < len(raw_params) - 1:
            ref = jnp.maximum(ref, 0.0)

    assert out.shape == (batch, output_size)
    # bf16 matmul inputs (f32 accumulation) vs a full-f32 reference -> relaxed tolerance.
    assert jnp.allclose(out, ref, atol=5e-2, rtol=5e-2), \
        float(jnp.max(jnp.abs(out - ref)))

    print("KERNEL_OK")
</pallas_src>

<mosaic_0001>
module attributes {stable_mosaic.version = 11 : i64} {
  func.func @_mlp_fused_kernel(%arg0: i32, %arg1: memref<8x1024xbf16, #tpu.memory_space<vmem>>, %arg2: memref<1024x128xbf16, #tpu.memory_space<vmem>>, %arg3: memref<128x128xbf16, #tpu.memory_space<vmem>>, %arg4: memref<128x128xbf16, #tpu.memory_space<vmem>>, %arg5: memref<8x128xf32, #tpu.memory_space<vmem>>, %arg6: memref<8x128xf32, #tpu.memory_space<vmem>>) attributes {dimension_semantics = [#tpu.dimension_semantics<parallel>], iteration_bounds = array<i64: 1>, scalar_prefetch = 0 : i64, scratch_operands = 0 : i64, tpu.core_type = #tpu.core_type<tc>, window_params = [{transform_indices = @transform_0, window_bounds = array<i64: 8, 1024>}, {pipeline_mode = #tpu.pipeline_mode<synchronous>, transform_indices = @transform_1, window_bounds = array<i64: 1024, 128>}, {pipeline_mode = #tpu.pipeline_mode<synchronous>, transform_indices = @transform_2, window_bounds = array<i64: 128, 128>}, {pipeline_mode = #tpu.pipeline_mode<synchronous>, transform_indices = @transform_3, window_bounds = array<i64: 128, 128>}, {pipeline_mode = #tpu.pipeline_mode<synchronous>, transform_indices = @transform_4, window_bounds = array<i64: 8, 128>}, {transform_indices = @transform_5, window_bounds = array<i64: 8, 128>}]} {
    %c0 = arith.constant 0 : index
    %c0_0 = arith.constant 0 : index
    %0 = vector.load %arg1[%c0, %c0_0] : memref<8x1024xbf16, #tpu.memory_space<vmem>>, vector<8x1024xbf16>
    %c0_1 = arith.constant 0 : index
    %c0_2 = arith.constant 0 : index
    %1 = vector.load %arg2[%c0_1, %c0_2] : memref<1024x128xbf16, #tpu.memory_space<vmem>>, vector<1024x128xbf16>
    %cst = arith.constant dense<0.000000e+00> : vector<8x128xf32>
    %2 = tpu.matmul %0, %1, %cst {dimension_numbers = #tpu.dot_dimension_numbers<[1], [0], [0], [1], [0, 0, 1, 1], [], []>} : vector<8x1024xbf16>, vector<1024x128xbf16>, vector<8x128xf32> -> vector<8x128xf32>
    %c0_3 = arith.constant 0 : index
    %c0_4 = arith.constant 0 : index
    %3 = vector.load %arg5[%c0_3, %c0_4] : memref<8x128xf32, #tpu.memory_space<vmem>>, vector<1x128xf32>
    %4 = vector.broadcast %3 : vector<1x128xf32> to vector<8x128xf32>
    %5 = arith.addf %2, %4 : vector<8x128xf32>
    %cst_5 = arith.constant 0.000000e+00 : f32
    %6 = vector.broadcast %cst_5 : f32 to vector<8x128xf32>
    %7 = arith.maximumf %5, %6 : vector<8x128xf32>
    %8 = arith.truncf %7 : vector<8x128xf32> to vector<8x128xbf16>
    %c0_6 = arith.constant 0 : index
    %c0_7 = arith.constant 0 : index
    %9 = vector.load %arg3[%c0_6, %c0_7] : memref<128x128xbf16, #tpu.memory_space<vmem>>, vector<128x128xbf16>
    %cst_8 = arith.constant dense<0.000000e+00> : vector<8x128xf32>
    %10 = tpu.matmul %8, %9, %cst_8 {dimension_numbers = #tpu.dot_dimension_numbers<[1], [0], [0], [1], [0, 0, 1, 1], [], []>} : vector<8x128xbf16>, vector<128x128xbf16>, vector<8x128xf32> -> vector<8x128xf32>
    %c1 = arith.constant 1 : index
    %c0_9 = arith.constant 0 : index
    %11 = vector.load %arg5[%c1, %c0_9] : memref<8x128xf32, #tpu.memory_space<vmem>>, vector<1x128xf32>
    %12 = vector.broadcast %11 : vector<1x128xf32> to vector<8x128xf32>
    %13 = arith.addf %10, %12 : vector<8x128xf32>
    %cst_10 = arith.constant 0.000000e+00 : f32
    %14 = vector.broadcast %cst_10 : f32 to vector<8x128xf32>
    %15 = arith.maximumf %13, %14 : vector<8x128xf32>
    %16 = arith.truncf %15 : vector<8x128xf32> to vector<8x128xbf16>
    %c0_11 = arith.constant 0 : index
    %c0_12 = arith.constant 0 : index
    %17 = vector.load %arg4[%c0_11, %c0_12] : memref<128x128xbf16, #tpu.memory_space<vmem>>, vector<128x128xbf16>
    %cst_13 = arith.constant dense<0.000000e+00> : vector<8x128xf32>
    %18 = tpu.matmul %16, %17, %cst_13 {dimension_numbers = #tpu.dot_dimension_numbers<[1], [0], [0], [1], [0, 0, 1, 1], [], []>} : vector<8x128xbf16>, vector<128x128xbf16>, vector<8x128xf32> -> vector<8x128xf32>
    %c2 = arith.constant 2 : index
    %c0_14 = arith.constant 0 : index
    %19 = vector.load %arg5[%c2, %c0_14] : memref<8x128xf32, #tpu.memory_space<vmem>>, vector<1x128xf32>
    %20 = vector.broadcast %19 : vector<1x128xf32> to vector<8x128xf32>
    %21 = arith.addf %18, %20 : vector<8x128xf32>
    %c0_15 = arith.constant 0 : index
    %c0_16 = arith.constant 0 : index
    %22 = vector.load %arg6[%c0_15, %c0_16] : memref<8x128xf32, #tpu.memory_space<vmem>>, vector<8x128xf32>
    tpu.vector_store %arg6[%c0_15, %c0_16], %21 {strides = array<i32>} : memref<8x128xf32, #tpu.memory_space<vmem>>, vector<8x128xf32>,
    return
  }
  func.func @transform_0(%arg0: i32) -> (i32, i32) {
    %c0_i32 = arith.constant 0 : i32
    %c0_i32_0 = arith.constant 0 : i32
    return %arg0, %c0_i32 : i32, i32
  }
  func.func @transform_1(%arg0: i32) -> (i32, i32) {
    %c0_i32 = arith.constant 0 : i32
    %c0_i32_0 = arith.constant 0 : i32
    %c0_i32_1 = arith.constant 0 : i32
    return %c0_i32, %c0_i32_0 : i32, i32
  }
  func.func @transform_2(%arg0: i32) -> (i32, i32) {
    %c0_i32 = arith.constant 0 : i32
    %c0_i32_0 = arith.constant 0 : i32
    %c0_i32_1 = arith.constant 0 : i32
    return %c0_i32, %c0_i32_0 : i32, i32
  }
  func.func @transform_3(%arg0: i32) -> (i32, i32) {
    %c0_i32 = arith.constant 0 : i32
    %c0_i32_0 = arith.constant 0 : i32
    %c0_i32_1 = arith.constant 0 : i32
    return %c0_i32, %c0_i32_0 : i32, i32
  }
  func.func @transform_4(%arg0: i32) -> (i32, i32) {
    %c0_i32 = arith.constant 0 : i32
    %c0_i32_0 = arith.constant 0 : i32
    %c0_i32_1 = arith.constant 0 : i32
    return %c0_i32, %c0_i32_0 : i32, i32
  }
  func.func @transform_5(%arg0: i32) -> (i32, i32) {
    %c0_i32 = arith.constant 0 : i32
    %c0_i32_0 = arith.constant 0 : i32
    return %arg0, %c0_i32 : i32, i32
  }
}

</mosaic_0001>

<bundles_post_ra>
// kernel: _lambda_.1
= control target key start
LH: loop header
LB: loop body
LE: loop exit
PB: predicated region body
PF: predicated region fallthrough
CT: control target
= control target key end

     0   :  { %10 = vsyncpa [#allocation3], 0  ;;  %s1286_s21 = smov [#allocation2]   ;;  %s1287_s23 = smov 64   ;;  %s1394_s0 = inlined_call_operand.vmem [shape: bf16[8,1024], index: 0, kind: input, shape index: {}]   ;;  %s1395_s1 = inlined_call_operand.hbm [shape: bf16[1024,128], index: 1, kind: input, shape index: {}]   ;;  %s1396_s2 = inlined_call_operand.vmem [shape: bf16[128,128], index: 2, kind: input, shape index: {}]   ;;  %s1397_s3 = inlined_call_operand.vmem [shape: bf16[128,128], index: 3, kind: input, shape index: {}]   ;;  %s1398_s4 = inlined_call_operand.vmem [shape: f32[8,128], index: 4, kind: input, shape index: {}]   ;;  %s1399_s5 = inlined_call_operand.vmem [shape: f32[8,128], index: 5, kind: output, shape index: {}]  }
   0x1   :  { %s17_s20 = sshll.u32 %s1395_s1, 4  ;;  %s19_s22 = sshll.u32 %s1286_s21, 4  ;;  %s18_s20 = int_to_ptr.hbm [resolvable:$true] %s17_s20  ;;  %s20_s22 = int_to_ptr.vmem [resolvable:$true] %s19_s22 }
   0x2   :  { %s1288_s24 = smov 4  }
   0x3   :  { %25 = dma.hbm_to_vmem [thread:$0]  %s18_s20, 8192, %s20_s22, [#allocation3], %s1287_s23, %s1287_s23, %s1288_s24  }
   0x4   :  { %1284 = dma.done.wait [#allocation3], 8192  }
   0x5   :  { %1285 = vsyncadd [#allocation3], 4294959104  ;;  %v1181_v0 = vld [vmem:[#allocation2 + $0x38] sm:$0xff]  ;;  %v1180_v4 = vld [vmem:[#allocation2 + $0x30] sm:$0xff] }
   0x6   :  { %v1189_v1 = vld [vmem:[#allocation2 + $0x78] sm:$0xff]  ;;  %582 = vmatpush.bf16.msra.mxu0 %v1181_v0  ;;  %v1188_v5 = vld [vmem:[#allocation2 + $0x70] sm:$0xff]  ;;  %v1179_v8 = vld [vmem:[#allocation2 + $0x28] sm:$0xff] }
   0x7   :  { %v1197_v2 = vld [vmem:[#allocation2 + $0xb8] sm:$0xff]  ;;  %595 = vmatpush.bf16.msra.mxu1 %v1189_v1  ;;  %v1196_v6 = vld [vmem:[#allocation2 + $0xb0] sm:$0xff]  ;;  %v1187_v9 = vld [vmem:[#allocation2 + $0x68] sm:$0xff] }
   0x8   :  { %v1205_v3 = vld [vmem:[#allocation2 + $0xf8] sm:$0xff]  ;;  %608 = vmatpush.bf16.msra.mxu2 %v1197_v2  ;;  %v1204_v7 = vld [vmem:[#allocation2 + $0xf0] sm:$0xff]  ;;  %v1195_v10 = vld [vmem:[#allocation2 + $0xa8] sm:$0xff] }
   0x9   :  { %621 = vmatpush.bf16.msra.mxu3 %v1205_v3  ;;  %v1203_v11 = vld [vmem:[#allocation2 + $0xe8] sm:$0xff]  ;;  %v1178_v12 = vld [vmem:[#allocation2 + $0x20] sm:$0xff]  ;;  %v1177_v16 = vld [vmem:[#allocation2 + $0x18] sm:$0xff] }
   0xa   :  { %583 = vmatpush.bf16.msra.mxu0 %v1180_v4  ;;  %v1186_v13 = vld [vmem:[#allocation2 + $0x60] sm:$0xff]  ;;  %v1185_v17 = vld [vmem:[#allocation2 + $0x58] sm:$0xff]  ;;  %v1176_v20 = vld [vmem:[#allocation2 + $0x10] sm:$0xff] }
   0xb   :  { %596 = vmatpush.bf16.msra.mxu1 %v1188_v5  ;;  %v1194_v14 = vld [vmem:[#allocation2 + $0xa0] sm:$0xff]  ;;  %v1193_v18 = vld [vmem:[#allocation2 + $0x98] sm:$0xff]  ;;  %v1184_v21 = vld [vmem:[#allocation2 + $0x50] sm:$0xff] }
   0xc   :  { %609 = vmatpush.bf16.msra.mxu2 %v1196_v6  ;;  %v1202_v15 = vld [vmem:[#allocation2 + $0xe0] sm:$0xff]  ;;  %v1201_v19 = vld [vmem:[#allocation2 + $0xd8] sm:$0xff]  ;;  %v1192_v22 = vld [vmem:[#allocation2 + $0x90] sm:$0xff] }
   0xd   :  { %622 = vmatpush.bf16.msra.mxu3 %v1204_v7  ;;  %v1200_v23 = vld [vmem:[#allocation2 + $0xd0] sm:$0xff]  ;;  %v1175_v24 = vld [vmem:[#allocation2 + $0x8] sm:$0xff]  ;;  %v36_v29 = vld [vmem:[%s1394_s0] sm:$0xff] }
   0xe   :  { %584 = vmatpush.bf16.msra.mxu0 %v1179_v8  ;;  %v1183_v25 = vld [vmem:[#allocation2 + $0x48] sm:$0xff]  ;;  %v1174_v30 = vld [vmem:[#allocation2] sm:$0xff]  ;;  %v174_v33 = vunpack.c.l.b16 %v36_v29  ;;  %v175_v37 = vunpack.c.h.b16 %v36_v29  ;;  %v1213_v38 = vld [vmem:[#allocation2 + $0x138] sm:$0xff] }
   0xf   :  { %597 = vmatpush.bf16.msra.mxu1 %v1187_v9  ;;  %v1191_v26 = vld [vmem:[#allocation2 + $0x88] sm:$0xff]  ;;  %v1182_v31 = vld [vmem:[#allocation2 + $0x40] sm:$0xff]  ;;  %v1221_v39 = vld [vmem:[#allocation2 + $0x178] sm:$0xff] }
  0x10   :  { %610 = vmatpush.bf16.msra.mxu2 %v1195_v10  ;;  %v1199_v27 = vld [vmem:[#allocation2 + $0xc8] sm:$0xff]  ;;  %v1190_v34 = vld [vmem:[#allocation2 + $0x80] sm:$0xff]  ;;  %v1229_v40 = vld [vmem:[#allocation2 + $0x1b8] sm:$0xff]  ;;  %v182_v43 = vpack.c.b16 %v174_v33, %v174_v33  ;;  %v183_v45 = vpack.c.b16 %v175_v37, %v175_v37 }
  0x11   :  { %623 = vmatpush.bf16.msra.mxu3 %v1203_v11  ;;  %v37_v28 = vld [vmem:[%s1394_s0 + $0x8] sm:$0xff]  ;;  %v1198_v35 = vld [vmem:[#allocation2 + $0xc0] sm:$0xff]  ;;  %v1237_v41 = vld [vmem:[#allocation2 + $0x1f8] sm:$0xff] }
  0x12   :  { %585 = vmatpush.bf16.msra.mxu0 %v1178_v12  ;;  %v176_v32 = vunpack.c.l.b16 %v37_v28  ;;  %v177_v36 = vunpack.c.h.b16 %v37_v28  ;;  %v1212_v46 = vld [vmem:[#allocation2 + $0x130] sm:$0xff]  ;;  %v1211_v50 = vld [vmem:[#allocation2 + $0x128] sm:$0xff]  ;;  %v1210_v54 = vld [vmem:[#allocation2 + $0x120] sm:$0xff] }
  0x13   :  { %598 = vmatpush.bf16.msra.mxu1 %v1186_v13  ;;  %v1220_v47 = vld [vmem:[#allocation2 + $0x170] sm:$0xff]  ;;  %v1219_v51 = vld [vmem:[#allocation2 + $0x168] sm:$0xff]  ;;  %v1218_v55 = vld [vmem:[#allocation2 + $0x160] sm:$0xff] }
  0x14   :  { %611 = vmatpush.bf16.msra.mxu2 %v1194_v14  ;;  %v184_v42 = vpack.c.b16 %v176_v32, %v176_v32  ;;  %v185_v44 = vpack.c.b16 %v177_v36, %v177_v36  ;;  %v1228_v48 = vld [vmem:[#allocation2 + $0x1b0] sm:$0xff]  ;;  %v1227_v52 = vld [vmem:[#allocation2 + $0x1a8] sm:$0xff]  ;;  %v1226_v56 = vld [vmem:[#allocation2 + $0x1a0] sm:$0xff] }
  0x15   :  { %624 = vmatpush.bf16.msra.mxu3 %v1202_v15  ;;  %v1236_v49 = vld [vmem:[#allocation2 + $0x1f0] sm:$0xff]  ;;  %v1235_v53 = vld [vmem:[#allocation2 + $0x1e8] sm:$0xff]  ;;  %v1234_v57 = vld [vmem:[#allocation2 + $0x1e0] sm:$0xff] }
  0x16   :  { %586 = vmatpush.bf16.msra.mxu0 %v1177_v16  ;;  %v1209_v58 = vld [vmem:[#allocation2 + $0x118] sm:$0xff]  ;;  %v1208_v62 = vld [vmem:[#allocation2 + $0x110] sm:$0xff]  ;;  %v1207_v2 = vld [vmem:[#allocation2 + $0x108] sm:$0xff] }
  0x17   :  { %599 = vmatpush.bf16.msra.mxu1 %v1185_v17  ;;  %v1217_v59 = vld [vmem:[#allocation2 + $0x158] sm:$0xff]  ;;  %v1216_v63 = vld [vmem:[#allocation2 + $0x150] sm:$0xff]  ;;  %v1215_v3 = vld [vmem:[#allocation2 + $0x148] sm:$0xff] }
  0x18   :  { %612 = vmatpush.bf16.msra.mxu2 %v1193_v18  ;;  %v1225_v60 = vld [vmem:[#allocation2 + $0x198] sm:$0xff]  ;;  %v1224_v0 = vld [vmem:[#allocation2 + $0x190] sm:$0xff]  ;;  %v1223_v5 = vld [vmem:[#allocation2 + $0x188] sm:$0xff] }
  0x19   :  { %625 = vmatpush.bf16.msra.mxu3 %v1201_v19  ;;  %v1233_v61 = vld [vmem:[#allocation2 + $0x1d8] sm:$0xff]  ;;  %v1232_v1 = vld [vmem:[#allocation2 + $0x1d0] sm:$0xff]  ;;  %v1231_v6 = vld [vmem:[#allocation2 + $0x1c8] sm:$0xff] }
  0x1a   :  { %587 = vmatpush.bf16.msra.mxu0 %v1176_v20  ;;  %v38_v4 = vld [vmem:[%s1394_s0 + $0x10] sm:$0xff]  ;;  %v39_v7 = vld [vmem:[%s1394_s0 + $0x18] sm:$0xff]  ;;  %v1206_v10 = vld [vmem:[#allocation2 + $0x100] sm:$0xff] }
  0x1b   :  { %600 = vmatpush.bf16.msra.mxu1 %v1184_v21  ;;  %v178_v8 = vunpack.c.l.b16 %v38_v4  ;;  %v179_v9 = vunpack.c.h.b16 %v38_v4  ;;  %v1214_v11 = vld [vmem:[#allocation2 + $0x140] sm:$0xff]  ;;  %v180_v12 = vunpack.c.l.b16 %v39_v7  ;;  %v181_v13 = vunpack.c.h.b16 %v39_v7  ;;  %v1245_v20 = vld [vmem:[%s1396_s2 + $0x38] sm:$0xff]  ;;  %v1244_v21 = vld [vmem:[%s1396_s2 + $0x30] sm:$0xff] }
  0x1c   :  { %613 = vmatpush.bf16.msra.mxu2 %v1192_v22  ;;  %v1222_v14 = vld [vmem:[#allocation2 + $0x180] sm:$0xff]  ;;  %v1243_v22 = vld [vmem:[%s1396_s2 + $0x28] sm:$0xff] }
  0x1d   :  { %626 = vmatpush.bf16.msra.mxu3 %v1200_v23  ;;  %v1230_v15 = vld [vmem:[#allocation2 + $0x1c0] sm:$0xff]  ;;  %v186_v16 = vpack.c.b16 %v178_v8, %v178_v8  ;;  %v187_v17 = vpack.c.b16 %v179_v9, %v179_v9  ;;  %v188_v18 = vpack.c.b16 %v180_v12, %v180_v12  ;;  %v189_v19 = vpack.c.b16 %v181_v13, %v181_v13  ;;  %v1239_v28 = vld [vmem:[%s1396_s2 + $0x8] sm:$0xff] }
  0x1e   :  { %588 = vmatpush.bf16.msra.mxu0 %v1175_v24  ;;  %v1242_v23 = vld [vmem:[%s1396_s2 + $0x20] sm:$0xff]  ;;  %v1241_v24 = vld [vmem:[%s1396_s2 + $0x18] sm:$0xff] }
  0x1f   :  { %601 = vmatpush.bf16.msra.mxu1 %v1183_v25  ;;  %v1238_v32 = vld [vmem:[%s1396_s2] sm:$0xff] }
  0x20   :  { %614 = vmatpush.bf16.msra.mxu2 %v1191_v26  ;;  %v1240_v26 = vld [vmem:[%s1396_s2 + $0x10] sm:$0xff] }
  0x21   :  { %627 = vmatpush.bf16.msra.mxu3 %v1199_v27 }
  0x22   :  { %589 = vmatpush.bf16.msra.mxu0 %v1174_v30 }
  0x23   :  { %602 = vmatpush.bf16.msra.mxu1 %v1182_v31 }
  0x24   :  { %615 = vmatpush.bf16.msra.mxu2 %v1190_v34  ;;  %v1257_v34 = vld [vmem:[%s1398_s4] ss:$0 sm:$0xff] }
  0x25   :  { %628 = vmatpush.bf16.msra.mxu3 %v1198_v35  ;;  %590 = vmatmul.bf16.vlgmr.msra.gmra.mxu0 %v182_v43  ;;  %v1253_v35 = vld [vmem:[%s1397_s3 + $0x38] sm:$0xff] }
  0x26   :  { %634 = vmatpush.bf16.msrb.mxu0 %v1213_v38  ;;  %603 = vmatmul.bf16.vlgmr.msra.gmra.mxu1 %v183_v45  ;;  %v1252_v38 = vld [vmem:[%s1397_s3 + $0x30] sm:$0xff] }
  0x27   :  { %647 = vmatpush.bf16.msrb.mxu1 %v1221_v39  ;;  %616 = vmatmul.bf16.vlgmr.msra.gmra.mxu2 %v184_v42  ;;  %v1250_v42 = vld [vmem:[%s1397_s3 + $0x20] sm:$0xff] }
  0x28   :  { %660 = vmatpush.bf16.msrb.mxu2 %v1229_v40  ;;  %629 = vmatmul.bf16.vlgmr.msra.gmra.mxu3 %v185_v44  ;;  %v1251_v40 = vld [vmem:[%s1397_s3 + $0x28] sm:$0xff]  ;;  %v1249_v44 = vld [vmem:[%s1397_s3 + $0x18] sm:$0xff] }
  0x29   :  { %673 = vmatpush.bf16.msrb.mxu3 %v1237_v41 }
  0x2a   :  { %635 = vmatpush.bf16.msrb.mxu0 %v1212_v46 }
  0x2b   :  { %648 = vmatpush.bf16.msrb.mxu1 %v1220_v47 }
  0x2c   :  { %661 = vmatpush.bf16.msrb.mxu2 %v1228_v48 }
  0x2d   :  { %674 = vmatpush.bf16.msrb.mxu3 %v1236_v49  ;;  %v1248_v49 = vld [vmem:[%s1397_s3 + $0x10] sm:$0xff] }
  0x2e   :  { %636 = vmatpush.bf16.msrb.mxu0 %v1211_v50 }
  0x2f   :  { %649 = vmatpush.bf16.msrb.mxu1 %v1219_v51 }
  0x30   :  { %662 = vmatpush.bf16.msrb.mxu2 %v1227_v52 }
  0x31   :  { %675 = vmatpush.bf16.msrb.mxu3 %v1235_v53 }
  0x32   :  { %637 = vmatpush.bf16.msrb.mxu0 %v1210_v54 }
  0x33   :  { %650 = vmatpush.bf16.msrb.mxu1 %v1218_v55 }
  0x34   :  { %663 = vmatpush.bf16.msrb.mxu2 %v1226_v56 }
  0x35   :  { %676 = vmatpush.bf16.msrb.mxu3 %v1234_v57 }
  0x36   :  { %638 = vmatpush.bf16.msrb.mxu0 %v1209_v58 }
  0x37   :  { %651 = vmatpush.bf16.msrb.mxu1 %v1217_v59 }
  0x38   :  { %664 = vmatpush.bf16.msrb.mxu2 %v1225_v60 }
  0x39   :  { %677 = vmatpush.bf16.msrb.mxu3 %v1233_v61  ;;  %v1247_v61 = vld [vmem:[%s1397_s3 + $0x8] sm:$0xff] }
  0x3a   :  { %639 = vmatpush.bf16.msrb.mxu0 %v1208_v62  ;;  %v1246_v62 = vld [vmem:[%s1397_s3] sm:$0xff] }
  0x3b   :  { %652 = vmatpush.bf16.msrb.mxu1 %v1216_v63  ;;  %v1258_v63 = vld [vmem:[%s1398_s4 + $0x1] ss:$0 sm:$0xff] }
  0x3c   :  { %665 = vmatpush.bf16.msrb.mxu2 %v1224_v0 }
  0x3d   :  { %678 = vmatpush.bf16.msrb.mxu3 %v1232_v1 }
  0x3e   :  { %640 = vmatpush.bf16.msrb.mxu0 %v1207_v2 }
  0x3f   :  { %653 = vmatpush.bf16.msrb.mxu1 %v1215_v3 }
  0x40   :  { %666 = vmatpush.bf16.msrb.mxu2 %v1223_v5  ;;  %v1259_v5 = vld [vmem:[%s1398_s4 + $0x2] ss:$0 sm:$0xff] }
  0x41   :  { %679 = vmatpush.bf16.msrb.mxu3 %v1231_v6 }
  0x42   :  { %641 = vmatpush.bf16.msrb.mxu0 %v1206_v10 }
  0x43   :  { %654 = vmatpush.bf16.msrb.mxu1 %v1214_v11 }
  0x44   :  { %667 = vmatpush.bf16.msrb.mxu2 %v1222_v14 }
  0x45   :  { %680 = vmatpush.bf16.msrb.mxu3 %v1230_v15  ;;  %642 = vmatmul.bf16.vlgmr.msrb.gmra.mxu0 %v186_v16 }
  0x46   :  { %655 = vmatmul.bf16.vlgmr.msrb.gmra.mxu1 %v187_v17  ;;  %754 = vmatpush.bf16.msra.mxu0 %v1245_v20 }
  0x47   :  { %668 = vmatmul.bf16.vlgmr.msrb.gmra.mxu2 %v188_v18  ;;  %835 = vmatpush.bf16.msra.mxu1 %v1253_v35 }
  0x48   :  { %681 = vmatmul.bf16.vlgmr.msrb.gmra.mxu3 %v189_v19 }
  0x4a   :  { %755 = vmatpush.bf16.msra.mxu0 %v1244_v21 }
  0x4b   :  { %836 = vmatpush.bf16.msra.mxu1 %v1252_v38 }
  0x4e   :  { %756 = vmatpush.bf16.msra.mxu0 %v1243_v22 }
  0x4f   :  { %837 = vmatpush.bf16.msra.mxu1 %v1251_v40 }
  0x52   :  { %757 = vmatpush.bf16.msra.mxu0 %v1242_v23 }
  0x53   :  { %838 = vmatpush.bf16.msra.mxu1 %v1250_v42 }
  0x56   :  { %758 = vmatpush.bf16.msra.mxu0 %v1241_v24 }
  0x57   :  { %839 = vmatpush.bf16.msra.mxu1 %v1249_v44 }
  0x5a   :  { %759 = vmatpush.bf16.msra.mxu0 %v1240_v26 }
  0x5b   :  { %840 = vmatpush.bf16.msra.mxu1 %v1248_v49 }
  0x5e   :  { %760 = vmatpush.bf16.msra.mxu0 %v1239_v28 }
  0x5f   :  { %841 = vmatpush.bf16.msra.mxu1 %v1247_v61 }
  0x62   :  { %761 = vmatpush.bf16.msra.mxu0 %v1238_v32 }
  0x63   :  { %842 = vmatpush.bf16.msra.mxu1 %v1246_v62 }
  0xa2   :  { %v591_v25 = vpop.f32.mrf.mxu0 }
  0xa3   :  { %v604_v27 = vpop.f32.mrf.mxu1  ;;  %v592_v39 = vadd.f32 %v1257_v34, %v591_v25 }
  0xa5   :  { %v605_v41 = vadd.f32 %v604_v27, %v592_v39 }
  0xaa   :  { %v617_v29 = vpop.f32.mrf.mxu2  ;;  %v593_v31 = vpop.f32.mrf.mxu0 }
  0xab   :  { %v630_v30 = vpop.f32.mrf.mxu3  ;;  %v606_v33 = vpop.f32.mrf.mxu1  ;;  %v618_v43 = vadd.f32 %v617_v29, %v605_v41 }
  0xad   :  { %v631_v45 = vadd.f32 %v630_v30, %v618_v43 }
  0xb2   :  { %v619_v36 = vpop.f32.mrf.mxu2 }
  0xb3   :  { %v632_v37 = vpop.f32.mrf.mxu3 }
  0xc2   :  { %v643_v46 = vpop.f32.mrf.mxu0 }
  0xc3   :  { %v656_v47 = vpop.f32.mrf.mxu1  ;;  %v644_v48 = vadd.f32 %v643_v46, %v631_v45 }
  0xc5   :  { %v657_v50 = vadd.f32 %v656_v47, %v644_v48 }
  0xca   :  { %v669_v51 = vpop.f32.mrf.mxu2  ;;  %v645_v54 = vpop.f32.mrf.mxu0 }
  0xcb   :  { %v682_v52 = vpop.f32.mrf.mxu3  ;;  %v670_v53 = vadd.f32 %v669_v51, %v657_v50  ;;  %v658_v55 = vpop.f32.mrf.mxu1 }
  0xcd   :  { %v683_v56 = vadd.f32 %v682_v52, %v670_v53 }
  0xcf   :  { %v686_v57 = vmax.f32 %v683_v56, 0.0 }
  0xd1   :  { %v687_v58 = vpack.c.bf16 %v686_v57, %v686_v57 }
  0xd2   :  { %v671_v59 = vpop.f32.mrf.mxu2 }
  0xd3   :  { %v684_v60 = vpop.f32.mrf.mxu3  ;;  %762 = vmatmul.bf16.vlgmr.msra.gmra.mxu0 %v687_v58 }
 0x150   :  { %v763_v0 = vpop.f32.mrf.mxu0 }
 0x151   :  { %v764_v1 = vadd.f32 %v1258_v63, %v763_v0 }
 0x153   :  { %v767_v2 = vmax.f32 %v764_v1, 0.0 }
 0x155   :  { %v768_v3 = vpack.c.bf16 %v767_v2, %v767_v2 }
 0x157   :  { %843 = vmatmul.bf16.vlgmr.msra.gmra.mxu1 %v768_v3 }
 0x158   :  { %v765_v4 = vpop.f32.mrf.mxu0 }
 0x1d4   :  { %v844_v6 = vpop.f32.mrf.mxu1 }
 0x1d5   :  { %v845_v7 = vadd.f32 %v1259_v5, %v844_v6 }
 0x1d7   :  { %848 = vst [vmem:[%s1399_s5] sm:$0xff] %v845_v7 }
 0x1dc   :  { %v846_v8 = vpop.f32.mrf.mxu1 }
 0x1dd   :  { %853 = vsyncpa [#allocation3], 1 }

</bundles_post_ra>
